<compile_context>
chip_gen: v5e
topology: v5e:2x2
jax: 0.10.0
libtpu: 0.0.40
codegen_flags: <defaults>
</compile_context>

<pallas_src>
import jax
import jax.numpy as jnp
from jax.experimental import pallas as pl
from jax.experimental.pallas import tpu as pltpu

# ----------------------------- config / shapes ------------------------------
B, N, C, L = 2, 4, 8, 16           # (B, N, C, L) input
M = B * N                          # number of "sequences" fed to the encoder = 8
D = C * L                          # flattened feature dim per sequence = 128
HIDDEN = 128
LATENT = 32
HEAD = 128                         # fused mu|logvar|pad|logvar-copy head (full lane tile)
VARIANCE = 0.1                     # cfg['vae'].get('variance', 0.1)

# Packed-weight-slab row offsets (all blocks are 128 lanes wide).
ROW_WE1 = 0                        # (D, HIDDEN)        rows   0:128
ROW_WH = 128                       # (HIDDEN, HEAD)     rows 128:256
ROW_WD1 = 256                      # (HEAD, HIDDEN)     rows 256:384   (rows >= LATENT are zero)
ROW_WD2 = 384                      # (HIDDEN, D)        rows 384:512
ROW_B = 512                        # be1, bh, bd1, bd2  rows 512..515
W_ROWS = 520                       # padded to a multiple of 8 sublanes


# ------------------------------- Pallas kernel -------------------------------
def vae_kernel(x_ref, eps_ref, w_ref, out_ref):
    # Carve the packed weight slab with static slices (free).
    we1 = w_ref[ROW_WE1:ROW_WE1 + D, :]
    wh = w_ref[ROW_WH:ROW_WH + HIDDEN, :]
    wd1 = w_ref[ROW_WD1:ROW_WD1 + HEAD, :]
    wd2 = w_ref[ROW_WD2:ROW_WD2 + HIDDEN, :]
    be1 = w_ref[ROW_B + 0:ROW_B + 1, :]
    bh = w_ref[ROW_B + 1:ROW_B + 2, :]
    bd1 = w_ref[ROW_B + 2:ROW_B + 3, :]
    bd2 = w_ref[ROW_B + 3:ROW_B + 4, :]

    # Encoder MLP: (M, D) @ (D, HIDDEN) -> relu
    x = x_ref[...]
    h = jnp.dot(x, we1, preferred_element_type=jnp.float32) + be1
    h = jnp.maximum(h, 0.0)

    # Fused head, one (HIDDEN, 128) matmul -> lane-dense (M, 128):
    #   lanes 0:32 = mu, 32:64 = logvar, 64:96 = 0, 96:128 = logvar (copy).
    mulv = jnp.dot(h, wh, preferred_element_type=jnp.float32) + bh

    # Reparameterize on the full 128-lane slab (no sub-lane slicing).
    # The logvar copy at lanes 96:128 makes the roll correct for either rotation
    # direction: lanes 0:LATENT of `rolled` hold logvar either way.
    rolled = pltpu.roll(mulv, HEAD - LATENT, axis=1)      # XLU slot, ~free
    std_slab = jnp.exp(0.5 * rolled)                      # EUP slot, ~free
    z_pad = mulv + eps_ref[...] * std_slab * VARIANCE     # (M, 128); lanes >= LATENT are junk

    # Decoder MLP: junk lanes of z_pad hit zero rows of wd1 -> exact zeros.
    h2 = jnp.dot(z_pad, wd1, preferred_element_type=jnp.float32) + bd1
    h2 = jnp.maximum(h2, 0.0)
    y = jnp.dot(h2, wd2, preferred_element_type=jnp.float32) + bd2

    # Single merged lane-dense output slab; both stores are 128-lane aligned (unmasked).
    out_ref[:, 0:D] = y
    out_ref[:, D:D + HEAD] = mulv


def _vmem_spec():
    return pl.BlockSpec(memory_space=pltpu.MemorySpace.VMEM)


def _cost_estimate():
    flops = 2 * M * (D * HIDDEN + HIDDEN * HEAD + HEAD * HIDDEN + HIDDEN * D)
    transcendentals = M * HEAD
    bytes_accessed = 4 * (M * D + M * HEAD          # x, eps_pad
                          + W_ROWS * HEAD           # packed weight slab
                          + M * (D + HEAD))         # merged output slab
    return pl.CostEstimate(flops=flops, transcendentals=transcendentals,
                           bytes_accessed=bytes_accessed)


@jax.jit
def vae_forward(x, eps, w_slab):
    """x: (B, N, C, L) f32; eps: (B*N, LATENT) f32; w_slab: packed params from prepare_params.

    Returns (z, mu, logvar) matching the torch module's forward.
    """
    Bx, Nx, Cx, Lx = x.shape
    Mx, Dx = Bx * Nx, Cx * Lx

    # Free contiguous reshape: the torch transpose(-1,-2) reordering is folded into the
    # permuted encoder-input / decoder-output weights (prepare_params).
    xf = x.reshape(Mx, Dx)
    # Lane-dense eps tile (zeros beyond LATENT).
    eps_pad = jnp.pad(eps, ((0, 0), (0, HEAD - LATENT)))

    out = pl.pallas_call(
        vae_kernel,
        out_shape=jax.ShapeDtypeStruct((Mx, Dx + HEAD), jnp.float32),
        in_specs=[_vmem_spec()] * 3,
        out_specs=_vmem_spec(),
        cost_estimate=_cost_estimate(),
        # Gridless single-TC by design: total footprint ~300 KB << VMEM on v5e/v6e/v7x;
        # a grid only adds per-step overhead at M=8 (add one over M + "parallel" if M scales).
    )(xf, eps_pad, w_slab)

    z = out[:, :Dx].reshape(Bx, Nx, Cx, Lx)        # kernel y is already (C, L)-ordered
    mu = out[:, Dx:Dx + LATENT]
    logvar = out[:, Dx + LATENT:Dx + 2 * LATENT]
    return z, mu, logvar


# ----------------------------- deterministic init ----------------------------
def init_params(key):
    """Original (torch-semantics) parameters: encoder consumes (L, C)-flattened input."""
    ks = jax.random.split(key, 5)

    def lin(k, fan_in, fan_out):
        scale = 1.0 / jnp.sqrt(jnp.float32(fan_in))
        return jax.random.uniform(k, (fan_in, fan_out), jnp.float32, -scale, scale)

    return {
        "we1": lin(ks[0], D, HIDDEN),       "be1": jnp.zeros((1, HIDDEN), jnp.float32),
        "wmu": lin(ks[1], HIDDEN, LATENT),  "bmu": jnp.zeros((1, LATENT), jnp.float32),
        "wlv": lin(ks[2], HIDDEN, LATENT),  "blv": jnp.zeros((1, LATENT), jnp.float32),
        "wd1": lin(ks[3], LATENT, HIDDEN),  "bd1": jnp.zeros((1, HIDDEN), jnp.float32),
        "wd2": lin(ks[4], HIDDEN, D),       "bd2": jnp.zeros((1, D), jnp.float32),
    }


def prepare_params(params):
    """One-time param prep:
       * fold torch's transpose(-1,-2) into the encoder-input / decoder-output weights,
       * fuse mu/logvar heads into one 128-lane head (with a duplicated logvar block),
       * zero-pad wd1 to a full 128-row K so padded-z junk lanes multiply into zero,
       * pack everything into a single (W_ROWS, 128) f32 slab -> one input DMA."""
    # Encoder input weight: rows were indexed (l*C + c); permute to (c*L + l).
    we1_p = (params["we1"].reshape(L, C, HIDDEN)
             .transpose(1, 0, 2).reshape(D, HIDDEN))

    # Fused head: [mu | logvar | 0 | logvar-copy]  (HIDDEN, 128).
    zeros_lat = jnp.zeros((HIDDEN, LATENT), jnp.float32)
    wh = jnp.concatenate([params["wmu"], params["wlv"], zeros_lat, params["wlv"]], axis=1)
    bh = jnp.concatenate([params["bmu"], params["blv"],
                          jnp.zeros((1, LATENT), jnp.float32), params["blv"]], axis=1)

    # Decoder first layer, K padded 32 -> 128 with zero rows.
    wd1_p = jnp.pad(params["wd1"], ((0, HEAD - LATENT), (0, 0)))

    # Decoder output weight: columns were (l*C + c); permute to (c*L + l).
    wd2_p = (params["wd2"].reshape(HIDDEN, L, C)
             .transpose(0, 2, 1).reshape(HIDDEN, D))
    bd2_p = params["bd2"].reshape(1, L, C).transpose(0, 2, 1).reshape(1, D)

    slab = jnp.concatenate([
        we1_p,                                            # rows   0:128
        wh,                                               # rows 128:256
        wd1_p,                                            # rows 256:384
        wd2_p,                                            # rows 384:512
        params["be1"],                                    # row 512
        bh,                                               # row 513
        params["bd1"],                                    # row 514
        bd2_p,                                            # row 515
        jnp.zeros((W_ROWS - 516, HEAD), jnp.float32),     # pad to 520 rows
    ], axis=0)
    return slab


# ------------------------------------ main -----------------------------------
if __name__ == "__main__":
    key = jax.random.PRNGKey(0)
    k_x, k_eps, k_p = jax.random.split(key, 3)

    x = jax.random.normal(k_x, (B, N, C, L), dtype=jnp.float32)
    # torch uses eps = randn_like(std) internally; we pass eps explicitly.
    eps = jax.random.normal(k_eps, (M, LATENT), dtype=jnp.float32)

    params = init_params(k_p)
    w_slab = prepare_params(params)

    z, mu, logvar = vae_forward(x, eps, w_slab)
    jax.block_until_ready((z, mu, logvar))

    assert z.shape == (B, N, C, L)
    assert mu.shape == (M, LATENT)
    assert logvar.shape == (M, LATENT)

    # Reference: plain JAX with the ORIGINAL (unpermuted, unfused, unpadded) params and
    # the exact torch-style transposes/reshapes from VAE.forward.
    x2 = jnp.transpose(x, (0, 1, 3, 2)).reshape(M, D)
    h = jnp.maximum(x2 @ params["we1"] + params["be1"], 0.0)
    mu_r = h @ params["wmu"] + params["bmu"]
    lv_r = h @ params["wlv"] + params["blv"]
    z_r = mu_r + eps * jnp.exp(0.5 * lv_r) * VARIANCE
    h2 = jnp.maximum(z_r @ params["wd1"] + params["bd1"], 0.0)
    y_r = h2 @ params["wd2"] + params["bd2"]
    z_ref = jnp.transpose(y_r.reshape(M, L, C), (0, 2, 1)).reshape(B, N, C, L)

    assert jnp.allclose(z, z_ref, atol=1e-4, rtol=1e-4)
    assert jnp.allclose(mu, mu_r, atol=1e-4, rtol=1e-4)
    assert jnp.allclose(logvar, lv_r, atol=1e-4, rtol=1e-4)

    print("KERNEL_OK")
</pallas_src>

<mosaic_0001>
module attributes {stable_mosaic.version = 11 : i64} {
  func.func @vae_kernel(%arg0: memref<8x128xf32, #tpu.memory_space<vmem>>, %arg1: memref<8x128xf32, #tpu.memory_space<vmem>>, %arg2: memref<520x128xf32, #tpu.memory_space<vmem>>, %arg3: memref<8x256xf32, #tpu.memory_space<vmem>>) attributes {dimension_semantics = [], scalar_prefetch = 0 : i64, scratch_operands = 0 : i64, tpu.core_type = #tpu.core_type<tc>} {
    %c0 = arith.constant 0 : index
    %c0_0 = arith.constant 0 : index
    %0 = vector.load %arg2[%c0, %c0_0] : memref<520x128xf32, #tpu.memory_space<vmem>>, vector<128x128xf32>
    %c128 = arith.constant 128 : index
    %c0_1 = arith.constant 0 : index
    %1 = vector.load %arg2[%c128, %c0_1] : memref<520x128xf32, #tpu.memory_space<vmem>>, vector<128x128xf32>
    %c256 = arith.constant 256 : index
    %c0_2 = arith.constant 0 : index
    %2 = vector.load %arg2[%c256, %c0_2] : memref<520x128xf32, #tpu.memory_space<vmem>>, vector<128x128xf32>
    %c384 = arith.constant 384 : index
    %c0_3 = arith.constant 0 : index
    %3 = vector.load %arg2[%c384, %c0_3] : memref<520x128xf32, #tpu.memory_space<vmem>>, vector<128x128xf32>
    %c512 = arith.constant 512 : index
    %c0_4 = arith.constant 0 : index
    %4 = vector.load %arg2[%c512, %c0_4] : memref<520x128xf32, #tpu.memory_space<vmem>>, vector<1x128xf32>
    %c513 = arith.constant 513 : index
    %c0_5 = arith.constant 0 : index
    %5 = vector.load %arg2[%c513, %c0_5] : memref<520x128xf32, #tpu.memory_space<vmem>>, vector<1x128xf32>
    %c514 = arith.constant 514 : index
    %c0_6 = arith.constant 0 : index
    %6 = vector.load %arg2[%c514, %c0_6] : memref<520x128xf32, #tpu.memory_space<vmem>>, vector<1x128xf32>
    %c515 = arith.constant 515 : index
    %c0_7 = arith.constant 0 : index
    %7 = vector.load %arg2[%c515, %c0_7] : memref<520x128xf32, #tpu.memory_space<vmem>>, vector<1x128xf32>
    %c0_8 = arith.constant 0 : index
    %c0_9 = arith.constant 0 : index
    %8 = vector.load %arg0[%c0_8, %c0_9] : memref<8x128xf32, #tpu.memory_space<vmem>>, vector<8x128xf32>
    %cst = arith.constant dense<0.000000e+00> : vector<8x128xf32>
    %9 = tpu.matmul %8, %0, %cst {dimension_numbers = #tpu.dot_dimension_numbers<[1], [0], [0], [1], [0, 0, 1, 1], [], []>} : vector<8x128xf32>, vector<128x128xf32>, vector<8x128xf32> -> vector<8x128xf32>
    %10 = vector.broadcast %4 : vector<1x128xf32> to vector<8x128xf32>
    %11 = arith.addf %9, %10 : vector<8x128xf32>
    %cst_10 = arith.constant 0.000000e+00 : f32
    %12 = vector.broadcast %cst_10 : f32 to vector<8x128xf32>
    %13 = arith.maximumf %11, %12 : vector<8x128xf32>
    %cst_11 = arith.constant dense<0.000000e+00> : vector<8x128xf32>
    %14 = tpu.matmul %13, %1, %cst_11 {dimension_numbers = #tpu.dot_dimension_numbers<[1], [0], [0], [1], [0, 0, 1, 1], [], []>} : vector<8x128xf32>, vector<128x128xf32>, vector<8x128xf32> -> vector<8x128xf32>
    %15 = vector.broadcast %5 : vector<1x128xf32> to vector<8x128xf32>
    %16 = arith.addf %14, %15 : vector<8x128xf32>
    %c96_i32 = arith.constant 96 : i32
    %17 = tpu.dynamic_rotate %16 by %c96_i32 dim 1 : vector<8x128xf32>, i32 -> vector<8x128xf32>
    %cst_12 = arith.constant 5.000000e-01 : f32
    %18 = vector.broadcast %cst_12 : f32 to vector<8x128xf32>
    %19 = arith.mulf %18, %17 : vector<8x128xf32>
    %20 = math.exp %19 : vector<8x128xf32>
    %c0_13 = arith.constant 0 : index
    %c0_14 = arith.constant 0 : index
    %21 = vector.load %arg1[%c0_13, %c0_14] : memref<8x128xf32, #tpu.memory_space<vmem>>, vector<8x128xf32>
    %22 = arith.mulf %21, %20 : vector<8x128xf32>
    %cst_15 = arith.constant 1.000000e-01 : f32
    %23 = vector.broadcast %cst_15 : f32 to vector<8x128xf32>
    %24 = arith.mulf %22, %23 : vector<8x128xf32>
    %25 = arith.addf %16, %24 : vector<8x128xf32>
    %cst_16 = arith.constant dense<0.000000e+00> : vector<8x128xf32>
    %26 = tpu.matmul %25, %2, %cst_16 {dimension_numbers = #tpu.dot_dimension_numbers<[1], [0], [0], [1], [0, 0, 1, 1], [], []>} : vector<8x128xf32>, vector<128x128xf32>, vector<8x128xf32> -> vector<8x128xf32>
    %27 = vector.broadcast %6 : vector<1x128xf32> to vector<8x128xf32>
    %28 = arith.addf %26, %27 : vector<8x128xf32>
    %cst_17 = arith.constant 0.000000e+00 : f32
    %29 = vector.broadcast %cst_17 : f32 to vector<8x128xf32>
    %30 = arith.maximumf %28, %29 : vector<8x128xf32>
    %cst_18 = arith.constant dense<0.000000e+00> : vector<8x128xf32>
    %31 = tpu.matmul %30, %3, %cst_18 {dimension_numbers = #tpu.dot_dimension_numbers<[1], [0], [0], [1], [0, 0, 1, 1], [], []>} : vector<8x128xf32>, vector<128x128xf32>, vector<8x128xf32> -> vector<8x128xf32>
    %32 = vector.broadcast %7 : vector<1x128xf32> to vector<8x128xf32>
    %33 = arith.addf %31, %32 : vector<8x128xf32>
    %c0_19 = arith.constant 0 : index
    %c0_20 = arith.constant 0 : index
    %34 = vector.load %arg3[%c0_19, %c0_20] : memref<8x256xf32, #tpu.memory_space<vmem>>, vector<8x128xf32>
    tpu.vector_store %arg3[%c0_19, %c0_20], %33 {strides = array<i32>} : memref<8x256xf32, #tpu.memory_space<vmem>>, vector<8x128xf32>,
    %c0_21 = arith.constant 0 : index
    %c128_22 = arith.constant 128 : index
    %35 = vector.load %arg3[%c0_21, %c128_22] : memref<8x256xf32, #tpu.memory_space<vmem>>, vector<8x128xf32>
    tpu.vector_store %arg3[%c0_21, %c128_22], %16 {strides = array<i32>} : memref<8x256xf32, #tpu.memory_space<vmem>>, vector<8x128xf32>,
    return
  }
}

</mosaic_0001>

<bundles_post_ra>
// kernel: vae_forward.1
= control target key start
LH: loop header
LB: loop body
LE: loop exit
PB: predicated region body
PF: predicated region fallthrough
CT: control target
= control target key end

     0   :  { %8 = vsyncpa [#allocation3], 0  ;;  %s237_s15 = smov [#allocation2]   ;;  %s238_s17 = smov 128   ;;  %s276_s0 = inlined_call_operand.vmem [shape: f32[8,128], index: 0, kind: input, shape index: {}]   ;;  %s277_s1 = inlined_call_operand.vmem [shape: f32[8,128], index: 1, kind: input, shape index: {}]   ;;  %s278_s2 = inlined_call_operand.hbm [shape: f32[520,128], index: 2, kind: input, shape index: {}]   ;;  %s279_s3 = inlined_call_operand.vmem [shape: f32[8,256], index: 3, kind: output, shape index: {}]  }
   0x1   :  { %s17_s14 = sshll.u32 %s278_s2, 4  ;;  %s19_s16 = sshll.u32 %s237_s15, 4  ;;  %s18_s14 = int_to_ptr.hbm [resolvable:$true] %s17_s14  ;;  %s20_s16 = int_to_ptr.vmem [resolvable:$true] %s19_s16 }
   0x2   :  { %s239_s18 = smov 8  }
   0x3   :  { %25 = dma.hbm_to_vmem [thread:$0]  %s18_s14, 8320, %s20_s16, [#allocation3], %s238_s17, %s238_s17, %s239_s18  }
   0x4   :  { %235 = dma.done.wait [#allocation3], 8320  }
   0x5   :  { %236 = vsyncadd [#allocation3], 4294958976  ;;  %v45_v0 = vld [vmem:[#allocation2 + $0x78] sm:$0xff]  ;;  %v44_v1 = vld [vmem:[#allocation2 + $0x70] sm:$0xff]  ;;  %s240_s21 = smov 96  }
   0x6   :  { %100 = vmatpush.msra.mxu0 %v45_v0  ;;  %v43_v2 = vld [vmem:[#allocation2 + $0x68] sm:$0xff]  ;;  %v42_v3 = vld [vmem:[#allocation2 + $0x60] sm:$0xff]  ;;  %v61_v4 = vld [vmem:[#allocation2 + $0xf8] sm:$0xff] }
   0x7   :  { %v41_v5 = vld [vmem:[#allocation2 + $0x58] sm:$0xff]  ;;  %122 = vmatpush.msra.mxu1 %v61_v4  ;;  %v60_v6 = vld [vmem:[#allocation2 + $0xf0] sm:$0xff]  ;;  %v59_v7 = vld [vmem:[#allocation2 + $0xe8] sm:$0xff] }
   0x8   :  { %101 = vmatpush.msra.mxu0 %v44_v1  ;;  %v40_v8 = vld [vmem:[#allocation2 + $0x50] sm:$0xff]  ;;  %v58_v9 = vld [vmem:[#allocation2 + $0xe0] sm:$0xff]  ;;  %v39_v10 = vld [vmem:[#allocation2 + $0x48] sm:$0xff] }
   0x9   :  { %123 = vmatpush.msra.mxu1 %v60_v6  ;;  %v57_v11 = vld [vmem:[#allocation2 + $0xd8] sm:$0xff]  ;;  %v38_v12 = vld [vmem:[#allocation2 + $0x40] sm:$0xff]  ;;  %v56_v13 = vld [vmem:[#allocation2 + $0xd0] sm:$0xff] }
   0xa   :  { %102 = vmatpush.msra.mxu0 %v43_v2  ;;  %v37_v14 = vld [vmem:[#allocation2 + $0x38] sm:$0xff]  ;;  %v55_v15 = vld [vmem:[#allocation2 + $0xc8] sm:$0xff]  ;;  %v36_v16 = vld [vmem:[#allocation2 + $0x30] sm:$0xff] }
   0xb   :  { %124 = vmatpush.msra.mxu1 %v59_v7  ;;  %v54_v17 = vld [vmem:[#allocation2 + $0xc0] sm:$0xff]  ;;  %v35_v18 = vld [vmem:[#allocation2 + $0x28] sm:$0xff]  ;;  %v53_v19 = vld [vmem:[#allocation2 + $0xb8] sm:$0xff] }
   0xc   :  { %103 = vmatpush.msra.mxu0 %v42_v3  ;;  %v34_v20 = vld [vmem:[#allocation2 + $0x20] sm:$0xff]  ;;  %v52_v21 = vld [vmem:[#allocation2 + $0xb0] sm:$0xff]  ;;  %v33_v22 = vld [vmem:[#allocation2 + $0x18] sm:$0xff] }
   0xd   :  { %125 = vmatpush.msra.mxu1 %v58_v9  ;;  %v51_v23 = vld [vmem:[#allocation2 + $0xa8] sm:$0xff]  ;;  %v32_v24 = vld [vmem:[#allocation2 + $0x10] sm:$0xff]  ;;  %v50_v25 = vld [vmem:[#allocation2 + $0xa0] sm:$0xff] }
   0xe   :  { %104 = vmatpush.msra.mxu0 %v41_v5  ;;  %v31_v26 = vld [vmem:[#allocation2 + $0x8] sm:$0xff]  ;;  %v49_v27 = vld [vmem:[#allocation2 + $0x98] sm:$0xff]  ;;  %v30_v28 = vld [vmem:[#allocation2] sm:$0xff] }
   0xf   :  { %126 = vmatpush.msra.mxu1 %v57_v11  ;;  %v98_v29 = vld [vmem:[%s276_s0] sm:$0xff]  ;;  %v48_v30 = vld [vmem:[#allocation2 + $0x90] sm:$0xff]  ;;  %v47_v31 = vld [vmem:[#allocation2 + $0x88] sm:$0xff] }
  0x10   :  { %105 = vmatpush.msra.mxu0 %v40_v8  ;;  %v46_v32 = vld [vmem:[#allocation2 + $0x80] sm:$0xff]  ;;  %v77_v37 = vld [vmem:[#allocation2 + $0x178] sm:$0xff]  ;;  %v76_v38 = vld [vmem:[#allocation2 + $0x170] sm:$0xff] }
  0x11   :  { %127 = vmatpush.msra.mxu1 %v56_v13  ;;  %v205_v33 = vld [vmem:[#allocation2 + $0x200] ss:$0 sm:$0xff]  ;;  %152 = vmatpush.msra.mxu2 %v77_v37  ;;  %v75_v39 = vld [vmem:[#allocation2 + $0x168] sm:$0xff]  ;;  %v73_v41 = vld [vmem:[#allocation2 + $0x158] sm:$0xff] }
  0x12   :  { %106 = vmatpush.msra.mxu0 %v39_v10  ;;  %v74_v40 = vld [vmem:[#allocation2 + $0x160] sm:$0xff]  ;;  %v72_v42 = vld [vmem:[#allocation2 + $0x150] sm:$0xff]  ;;  %v71_v43 = vld [vmem:[#allocation2 + $0x148] sm:$0xff] }
  0x13   :  { %128 = vmatpush.msra.mxu1 %v55_v15  ;;  %153 = vmatpush.msra.mxu2 %v76_v38  ;;  %v206_v44 = vld [vmem:[#allocation2 + $0x201] ss:$0 sm:$0xff]  ;;  %v69_v48 = vld [vmem:[#allocation2 + $0x138] sm:$0xff]  ;;  %v68_v49 = vld [vmem:[#allocation2 + $0x130] sm:$0xff] }
  0x14   :  { %107 = vmatpush.msra.mxu0 %v38_v12  ;;  %v70_v47 = vld [vmem:[#allocation2 + $0x140] sm:$0xff]  ;;  %v67_v50 = vld [vmem:[#allocation2 + $0x128] sm:$0xff]  ;;  %v65_v52 = vld [vmem:[#allocation2 + $0x118] sm:$0xff] }
  0x15   :  { %129 = vmatpush.msra.mxu1 %v54_v17  ;;  %154 = vmatpush.msra.mxu2 %v75_v39  ;;  %v66_v51 = vld [vmem:[#allocation2 + $0x120] sm:$0xff]  ;;  %v64_v53 = vld [vmem:[#allocation2 + $0x110] sm:$0xff]  ;;  %v63_v54 = vld [vmem:[#allocation2 + $0x108] sm:$0xff] }
  0x16   :  { %108 = vmatpush.msra.mxu0 %v37_v14  ;;  %v62_v55 = vld [vmem:[#allocation2 + $0x100] sm:$0xff]  ;;  %v93_v56 = vld [vmem:[#allocation2 + $0x1f8] sm:$0xff]  ;;  %v92_v57 = vld [vmem:[#allocation2 + $0x1f0] sm:$0xff] }
  0x17   :  { %130 = vmatpush.msra.mxu1 %v53_v19  ;;  %155 = vmatpush.msra.mxu2 %v74_v40  ;;  %v91_v58 = vld [vmem:[#allocation2 + $0x1e8] sm:$0xff]  ;;  %v90_v59 = vld [vmem:[#allocation2 + $0x1e0] sm:$0xff]  ;;  %v89_v60 = vld [vmem:[#allocation2 + $0x1d8] sm:$0xff] }
  0x18   :  { %109 = vmatpush.msra.mxu0 %v36_v16  ;;  %174 = vmatpush.msra.mxu3 %v93_v56  ;;  %v88_v61 = vld [vmem:[#allocation2 + $0x1d0] sm:$0xff]  ;;  %v87_v62 = vld [vmem:[#allocation2 + $0x1c8] sm:$0xff]  ;;  %v86_v63 = vld [vmem:[#allocation2 + $0x1c0] sm:$0xff] }
  0x19   :  { %131 = vmatpush.msra.mxu1 %v52_v21  ;;  %156 = vmatpush.msra.mxu2 %v73_v41  ;;  %v85_v1 = vld [vmem:[#allocation2 + $0x1b8] sm:$0xff]  ;;  %v84_v3 = vld [vmem:[#allocation2 + $0x1b0] sm:$0xff]  ;;  %v83_v5 = vld [vmem:[#allocation2 + $0x1a8] sm:$0xff] }
  0x1a   :  { %110 = vmatpush.msra.mxu0 %v35_v18  ;;  %175 = vmatpush.msra.mxu3 %v92_v57  ;;  %v82_v6 = vld [vmem:[#allocation2 + $0x1a0] sm:$0xff]  ;;  %v81_v7 = vld [vmem:[#allocation2 + $0x198] sm:$0xff]  ;;  %v80_v13 = vld [vmem:[#allocation2 + $0x190] sm:$0xff] }
  0x1b   :  { %132 = vmatpush.msra.mxu1 %v51_v23  ;;  %157 = vmatpush.msra.mxu2 %v72_v42  ;;  %v147_v8 = vld [vmem:[%s277_s1] sm:$0xff]  ;;  %v79_v14 = vld [vmem:[#allocation2 + $0x188] sm:$0xff] }
  0x1c   :  { %111 = vmatpush.msra.mxu0 %v34_v20  ;;  %176 = vmatpush.msra.mxu3 %v91_v58  ;;  %v78_v15 = vld [vmem:[#allocation2 + $0x180] sm:$0xff] }
  0x1d   :  { %133 = vmatpush.msra.mxu1 %v50_v25  ;;  %158 = vmatpush.msra.mxu2 %v71_v43  ;;  %v207_v16 = vld [vmem:[#allocation2 + $0x202] ss:$0 sm:$0xff]  ;;  %v208_v20 = vld [vmem:[#allocation2 + $0x203] ss:$0 sm:$0xff] }
  0x1e   :  { %112 = vmatpush.msra.mxu0 %v33_v22  ;;  %177 = vmatpush.msra.mxu3 %v90_v59 }
  0x1f   :  { %134 = vmatpush.msra.mxu1 %v49_v27  ;;  %159 = vmatpush.msra.mxu2 %v70_v47 }
  0x20   :  { %113 = vmatpush.msra.mxu0 %v32_v24  ;;  %178 = vmatpush.msra.mxu3 %v89_v60 }
  0x21   :  { %135 = vmatpush.msra.mxu1 %v48_v30  ;;  %160 = vmatpush.msra.mxu2 %v69_v48 }
  0x22   :  { %114 = vmatpush.msra.mxu0 %v31_v26  ;;  %179 = vmatpush.msra.mxu3 %v88_v61 }
  0x23   :  { %136 = vmatpush.msra.mxu1 %v47_v31  ;;  %161 = vmatpush.msra.mxu2 %v68_v49 }
  0x24   :  { %115 = vmatpush.msra.mxu0 %v30_v28  ;;  %180 = vmatpush.msra.mxu3 %v87_v62 }
  0x25   :  { %116 = vmatmul.f32.vlgmr.msra.gmra.mxu0 %v98_v29  ;;  %137 = vmatpush.msra.mxu1 %v46_v32 }
  0x26   :  { %162 = vmatpush.msra.mxu2 %v67_v50  ;;  %181 = vmatpush.msra.mxu3 %v86_v63 }
  0x28   :  { %163 = vmatpush.msra.mxu2 %v66_v51  ;;  %182 = vmatpush.msra.mxu3 %v85_v1 }
  0x2a   :  { %164 = vmatpush.msra.mxu2 %v65_v52  ;;  %183 = vmatpush.msra.mxu3 %v84_v3 }
  0x2c   :  { %165 = vmatpush.msra.mxu2 %v64_v53  ;;  %184 = vmatpush.msra.mxu3 %v83_v5 }
  0x2e   :  { %166 = vmatpush.msra.mxu2 %v63_v54  ;;  %185 = vmatpush.msra.mxu3 %v82_v6 }
  0x30   :  { %167 = vmatpush.msra.mxu2 %v62_v55  ;;  %186 = vmatpush.msra.mxu3 %v81_v7 }
  0x32   :  { %187 = vmatpush.msra.mxu3 %v80_v13 }
  0x34   :  { %188 = vmatpush.msra.mxu3 %v79_v14 }
  0x36   :  { %189 = vmatpush.msra.mxu3 %v78_v15 }
  0xa2   :  { %v117_v34 = vpop.f32.mrf.mxu0 }
  0xa3   :  { %v118_v35 = vadd.f32 %v205_v33, %v117_v34 }
  0xa5   :  { %v120_v36 = vmax.f32 %v118_v35, 0.0 }
  0xa7   :  { %138 = vmatmul.f32.vlgmr.msra.gmra.mxu1 %v120_v36 }
 0x124   :  { %v139_v45 = vpop.f32.mrf.mxu1 }
 0x125   :  { %v140_v46 = vadd.f32 %v206_v44, %v139_v45 }
 0x127   :  { %195 = vst [vmem:[%s279_s3 + $0x8] sm:$0xff] %v140_v46  ;;  %142 = vrot.lane.b32.xlu0 %v140_v46, %s240_s21 }
 0x199   :  { %v143_v0 = vpop.permute.xlu0 %142 }
 0x19a   :  { %v144_v2 = vmul.f32 0.5, %v143_v0 }
 0x19c   :  { %v145_v4 = vmul.f32 1.442695, %v144_v2 }
 0x19e   :  { %209 = vpow2.f32 %v145_v4 }
 0x1a4   :  { %v210_v9 = vpop.eup %209 }
 0x1a5   :  { %v148_v10 = vmul.f32 %v210_v9, %v147_v8 }
 0x1a7   :  { %v149_v11 = vmul.f32 0.1, %v148_v10 }
 0x1a9   :  { %v150_v12 = vadd.f32 %v149_v11, %v140_v46 }
 0x1ab   :  { %168 = vmatmul.f32.vlgmr.msra.gmra.mxu2 %v150_v12 }
 0x22e   :  { %v169_v17 = vpop.f32.mrf.mxu2 }
 0x22f   :  { %v170_v18 = vadd.f32 %v207_v16, %v169_v17 }
 0x231   :  { %v172_v19 = vmax.f32 %v170_v18, 0.0 }
 0x233   :  { %190 = vmatmul.f32.vlgmr.msra.gmra.mxu3 %v172_v19 }
 0x2b6   :  { %v191_v21 = vpop.f32.mrf.mxu3 }
 0x2b7   :  { %v192_v22 = vadd.f32 %v208_v20, %v191_v21 }
 0x2b9   :  { %194 = vst [vmem:[%s279_s3] sm:$0xff] %v192_v22 }
 0x2ba   :  { %200 = vsyncpa [#allocation3], 1 }

</bundles_post_ra>
